<compile_context>
chip_gen: v7x
topology: tpu7x:2x2x1
jax: 0.10.0
libtpu: 0.0.40
codegen_flags: <defaults>
</compile_context>

<pallas_src>
import math

import jax
import jax.numpy as jnp
from jax.experimental import pallas as pl
from jax.experimental.pallas import tpu as pltpu


# -----------------------------------------------------------------------------
# Kernel bodies.
#   x_ref  : (2, ts, K)  channel 0 = mean, channel 1 = variance (compute dtype)
#   wt_ref : (K, to)     W.T tile, compute dtype
#   b_ref  : (1, to)     f32 bias tile (bias variant only)
#   out_ref: (2, ts, to)
# W^2 is computed in-kernel from the single streamed W.T tile; accumulation is
# always f32 via preferred_element_type.
# -----------------------------------------------------------------------------
def _rv_linear_kernel_bias(x_ref, wt_ref, b_ref, out_ref):
    wt = wt_ref[...]
    out_mean = jnp.dot(x_ref[0], wt, preferred_element_type=jnp.float32) + b_ref[...]
    out_var = jnp.dot(x_ref[1], wt * wt, preferred_element_type=jnp.float32)
    out_ref[0] = out_mean.astype(out_ref.dtype)
    out_ref[1] = out_var.astype(out_ref.dtype)


def _rv_linear_kernel_nobias(x_ref, wt_ref, out_ref):
    wt = wt_ref[...]
    out_mean = jnp.dot(x_ref[0], wt, preferred_element_type=jnp.float32)
    out_var = jnp.dot(x_ref[1], wt * wt, preferred_element_type=jnp.float32)
    out_ref[0] = out_mean.astype(out_ref.dtype)
    out_ref[1] = out_var.astype(out_ref.dtype)


def _vmem_capacity_bytes():
    try:
        return int(pltpu.get_tpu_info().vmem_capacity_bytes)
    except Exception:
        return 64 * 1024 * 1024  # conservative default (v7x per-core VMEM)


def _pick_tiles(rows, K, O, isz, has_bias, budget):
    """Pick (ts, to).  Prefers to == O (weights DMA'd once), then larger row
    tiles, subject to a double-buffered VMEM estimate fitting `budget`."""

    def est(ts, to):
        b = (2 * (2 * ts * K) * isz        # x block        (double-buffered)
             + 2 * (K * to) * isz          # W.T tile       (double-buffered)
             + 2 * (2 * ts * to) * isz)    # output block   (double-buffered)
        if has_bias:
            b += 2 * to * 4                # f32 bias tile
        return b

    # Row-tile candidates: full extent (always a legal block) first, then
    # 8-aligned tiles.  Column tiles: full O first, then 128-aligned tiles.
    ts_cands = ([rows] if rows <= 1024 else []) + \
               [t for t in (1024, 512, 256, 128, 64, 32, 16, 8) if t < rows]
    to_cands = [O] + [t for t in (2048, 1024, 512, 256, 128) if t < O]

    for min_ts in (256, 64, 8):            # insist on a decent MXU M first
        for to in to_cands:
            for ts in ts_cands:
                if ts < min(rows, min_ts):
                    continue
                if est(ts, to) <= budget:
                    return ts, to
    return min(rows, 8), min(O, 128)


def rv_linear_pallas(x, weight, bias=None, *, fold_threshold=256):
    """x: (N, 2, *, K); weight: (O, K); bias: (O,) or None -> (N, 2, *, O)."""
    orig_shape = x.shape
    N, two = orig_shape[0], orig_shape[1]
    assert two == 2, "expected channel dim of size 2 (mean, variance)"
    K = orig_shape[-1]
    O = weight.shape[0]
    assert weight.shape == (O, K)

    out_dtype = x.dtype
    cdt = x.dtype                       # compute dtype: keep MXU operands matched
    isz = jnp.dtype(cdt).itemsize

    x4 = x.reshape(N, 2, -1, K)         # flatten the '*' dims (free reshape)
    S = x4.shape[2]

    # One-time weight prep: single pre-transposed (K, O) tensor in the compute
    # dtype.  W^2 is formed in-kernel (no second weight stream).
    wt = weight.astype(cdt).T           # (K, O)
    has_bias = bias is not None
    b2d = bias.astype(jnp.float32).reshape(1, O) if has_bias else None

    # Generation-aware VMEM budgeting.
    vmem_cap = _vmem_capacity_bytes()
    vmem_limit = int(vmem_cap * 0.85)
    tile_budget = int(vmem_cap * 0.65)

    # Fold batch into the row axis when S is small so the MXU M dim stays big;
    # free when N == 1, a one-time transpose otherwise.  Large-S inputs keep
    # their layout (avoids an extra HBM transpose pass on a mem-bound op).
    fold = (N == 1) or (S < fold_threshold)
    rows = N * S if fold else S
    ts, to = _pick_tiles(rows, K, O, isz, has_bias, tile_budget)

    kernel = _rv_linear_kernel_bias if has_bias else _rv_linear_kernel_nobias

    if fold:
        if N == 1:
            x3 = x4.reshape(2, rows, K)
        else:
            x3 = jnp.transpose(x4, (1, 0, 2, 3)).reshape(2, rows, K)

        grid = (pl.cdiv(O, to), pl.cdiv(rows, ts))  # j outer -> weights resident
        in_specs = [
            pl.BlockSpec((2, ts, K), lambda j, i: (0, i, 0)),   # x row tile
            pl.BlockSpec((K, to), lambda j, i: (0, j)),         # W.T tile
        ]
        if has_bias:
            in_specs.append(pl.BlockSpec((1, to), lambda j, i: (0, j)))
        out_spec = pl.BlockSpec((2, ts, to), lambda j, i: (0, i, j))
        out_shape = jax.ShapeDtypeStruct((2, rows, O), out_dtype)
        dims = ("parallel", "parallel")
        args = (x3, wt) + ((b2d,) if has_bias else ())
    else:
        grid = (pl.cdiv(O, to), N, pl.cdiv(S, ts))  # j outer, row tile innermost
        in_specs = [
            pl.BlockSpec((None, 2, ts, K), lambda j, n, i: (n, 0, i, 0)),
            pl.BlockSpec((K, to), lambda j, n, i: (0, j)),
        ]
        if has_bias:
            in_specs.append(pl.BlockSpec((1, to), lambda j, n, i: (0, j)))
        out_spec = pl.BlockSpec((None, 2, ts, to), lambda j, n, i: (n, 0, i, j))
        out_shape = jax.ShapeDtypeStruct((N, 2, S, O), out_dtype)
        dims = ("parallel", "parallel", "parallel")
        args = (x4, wt) + ((b2d,) if has_bias else ())

    out = pl.pallas_call(
        kernel,
        out_shape=out_shape,
        grid_spec=pltpu.PrefetchScalarGridSpec(
            num_scalar_prefetch=0,
            grid=grid,
            in_specs=in_specs,
            out_specs=out_spec,
        ),
        compiler_params=pltpu.CompilerParams(
            dimension_semantics=dims,
            vmem_limit_bytes=vmem_limit,
        ),
    )(*args)

    if fold:
        out = jnp.transpose(out.reshape(2, N, S, O), (1, 0, 2, 3))

    return out.reshape(*orig_shape[:-1], O)


def rv_linear_ref(x, weight, bias):
    mean = x[:, 0, ...]
    var = x[:, 1, ...]
    om = mean @ weight.T + (0.0 if bias is None else bias)
    ov = var @ (weight ** 2).T
    return jnp.stack((om, ov), axis=1)


if __name__ == "__main__":
    # Small deterministic setup: N=2, extra dim S=8, in_features=32, out_features=64
    N, S, K, O = 2, 8, 32, 64

    key = jax.random.PRNGKey(0)
    kx, kw, kb = jax.random.split(key, 3)

    x = jax.random.normal(kx, (N, 2, S, K), dtype=jnp.float32)
    # variance channel should be non-negative, like a real variance map
    x = x.at[:, 1, ...].set(jnp.abs(x[:, 1, ...]))

    # Kaiming-uniform(a=sqrt(5)) on (O, K) reduces to U(-1/sqrt(fan_in), 1/sqrt(fan_in))
    bound = 1.0 / math.sqrt(K)
    weight = jax.random.uniform(kw, (O, K), jnp.float32, -bound, bound)
    bias = jax.random.uniform(kb, (O,), jnp.float32, -bound, bound)

    out = rv_linear_pallas(x, weight, bias)
    out = jax.block_until_ready(out)

    ref = rv_linear_ref(x, weight, bias)
    assert out.shape == (N, 2, S, O), out.shape
    assert jnp.allclose(out, ref, atol=1e-5, rtol=1e-5), float(jnp.max(jnp.abs(out - ref)))

    # Also exercise the no-bias path once (cheap, small).
    out_nb = jax.block_until_ready(rv_linear_pallas(x, weight, None))
    ref_nb = rv_linear_ref(x, weight, None)
    assert jnp.allclose(out_nb, ref_nb, atol=1e-5, rtol=1e-5)

    print("KERNEL_OK")
</pallas_src>

<mosaic_0001>
module attributes {stable_mosaic.version = 11 : i64} {
  func.func @_rv_linear_kernel_bias(%arg0: i32, %arg1: i32, %arg2: memref<2x16x32xf32, #tpu.memory_space<vmem>>, %arg3: memref<32x64xf32, #tpu.memory_space<vmem>>, %arg4: memref<1x64xf32, #tpu.memory_space<vmem>>, %arg5: memref<2x16x64xf32, #tpu.memory_space<vmem>>) attributes {dimension_semantics = [#tpu.dimension_semantics<parallel>, #tpu.dimension_semantics<parallel>], iteration_bounds = array<i64: 1, 1>, scalar_prefetch = 0 : i64, scratch_operands = 0 : i64, tpu.core_type = #tpu.core_type<tc>, window_params = [{transform_indices = @transform_0, window_bounds = array<i64: 2, 16, 32>}, {transform_indices = @transform_1, window_bounds = array<i64: 32, 64>}, {transform_indices = @transform_2, window_bounds = array<i64: 1, 64>}, {transform_indices = @transform_3, window_bounds = array<i64: 2, 16, 64>}]} {
    %c0 = arith.constant 0 : index
    %c0_0 = arith.constant 0 : index
    %0 = vector.load %arg3[%c0, %c0_0] : memref<32x64xf32, #tpu.memory_space<vmem>>, vector<32x64xf32>
    %c0_1 = arith.constant 0 : index
    %c0_2 = arith.constant 0 : index
    %c0_3 = arith.constant 0 : index
    %1 = vector.load %arg2[%c0_1, %c0_2, %c0_3] : memref<2x16x32xf32, #tpu.memory_space<vmem>>, vector<1x16x32xf32>
    %2 = vector.shape_cast %1 : vector<1x16x32xf32> to vector<16x32xf32>
    %cst = arith.constant dense<0.000000e+00> : vector<16x64xf32>
    %3 = tpu.matmul %2, %0, %cst {dimension_numbers = #tpu.dot_dimension_numbers<[1], [0], [0], [1], [0, 0, 1, 1], [], []>} : vector<16x32xf32>, vector<32x64xf32>, vector<16x64xf32> -> vector<16x64xf32>
    %c0_4 = arith.constant 0 : index
    %c0_5 = arith.constant 0 : index
    %4 = vector.load %arg4[%c0_4, %c0_5] : memref<1x64xf32, #tpu.memory_space<vmem>>, vector<1x64xf32>
    %5 = vector.broadcast %4 : vector<1x64xf32> to vector<16x64xf32>
    %6 = arith.addf %3, %5 : vector<16x64xf32>
    %c1 = arith.constant 1 : index
    %c0_6 = arith.constant 0 : index
    %c0_7 = arith.constant 0 : index
    %7 = vector.load %arg2[%c1, %c0_6, %c0_7] : memref<2x16x32xf32, #tpu.memory_space<vmem>>, vector<1x16x32xf32>
    %8 = vector.shape_cast %7 : vector<1x16x32xf32> to vector<16x32xf32>
    %9 = arith.mulf %0, %0 : vector<32x64xf32>
    %cst_8 = arith.constant dense<0.000000e+00> : vector<16x64xf32>
    %10 = tpu.matmul %8, %9, %cst_8 {dimension_numbers = #tpu.dot_dimension_numbers<[1], [0], [0], [1], [0, 0, 1, 1], [], []>} : vector<16x32xf32>, vector<32x64xf32>, vector<16x64xf32> -> vector<16x64xf32>
    %c0_9 = arith.constant 0 : index
    %c0_10 = arith.constant 0 : index
    %c0_11 = arith.constant 0 : index
    %11 = vector.load %arg5[%c0_9, %c0_10, %c0_11] : memref<2x16x64xf32, #tpu.memory_space<vmem>>, vector<1x16x64xf32>
    %12 = vector.shape_cast %11 : vector<1x16x64xf32> to vector<16x64xf32>
    %13 = vector.shape_cast %6 : vector<16x64xf32> to vector<1x16x64xf32>
    tpu.vector_store %arg5[%c0_9, %c0_10, %c0_11], %13 {strides = array<i32>} : memref<2x16x64xf32, #tpu.memory_space<vmem>>, vector<1x16x64xf32>,
    %c1_12 = arith.constant 1 : index
    %c0_13 = arith.constant 0 : index
    %c0_14 = arith.constant 0 : index
    %14 = vector.load %arg5[%c1_12, %c0_13, %c0_14] : memref<2x16x64xf32, #tpu.memory_space<vmem>>, vector<1x16x64xf32>
    %15 = vector.shape_cast %14 : vector<1x16x64xf32> to vector<16x64xf32>
    %16 = vector.shape_cast %10 : vector<16x64xf32> to vector<1x16x64xf32>
    tpu.vector_store %arg5[%c1_12, %c0_13, %c0_14], %16 {strides = array<i32>} : memref<2x16x64xf32, #tpu.memory_space<vmem>>, vector<1x16x64xf32>,
    return
  }
  func.func @transform_0(%arg0: i32, %arg1: i32) -> (i32, i32, i32) {
    %c0_i32 = arith.constant 0 : i32
    %c0_i32_0 = arith.constant 0 : i32
    %c0_i32_1 = arith.constant 0 : i32
    return %c0_i32, %arg1, %c0_i32_0 : i32, i32, i32
  }
  func.func @transform_1(%arg0: i32, %arg1: i32) -> (i32, i32) {
    %c0_i32 = arith.constant 0 : i32
    %c0_i32_0 = arith.constant 0 : i32
    return %c0_i32, %arg0 : i32, i32
  }
  func.func @transform_2(%arg0: i32, %arg1: i32) -> (i32, i32) {
    %c0_i32 = arith.constant 0 : i32
    %c0_i32_0 = arith.constant 0 : i32
    return %c0_i32, %arg0 : i32, i32
  }
  func.func @transform_3(%arg0: i32, %arg1: i32) -> (i32, i32, i32) {
    %c0_i32 = arith.constant 0 : i32
    %c0_i32_0 = arith.constant 0 : i32
    return %c0_i32, %arg1, %arg0 : i32, i32, i32
  }
}

</mosaic_0001>

<bundles_post_ra>
// kernel: tpu_custom_call.1
= control target key start
LH: loop header
LB: loop body
LE: loop exit
PB: predicated region body
PF: predicated region fallthrough
CT: control target
= control target key end

     0   :  { %8 = vsyncpa [#allocation3], 0  ;;  %s459_s0 = inlined_call_operand.hbm [shape: f32[2,16,32], index: 0, kind: input, shape index: {}]   ;;  %s460_s1 = inlined_call_operand.hbm [shape: f32[32,64], index: 1, kind: input, shape index: {}]   ;;  %s461_s2 = inlined_call_operand.vmem [shape: f32[1,64], index: 2, kind: input, shape index: {}]   ;;  %s462_s3 = inlined_call_operand.hbm [shape: f32[2,16,64], index: 3, kind: output, shape index: {}]  }
   0x1   :  { %9 = vsyncpa [#allocation6], 0 }
   0x2   :  { %10 = vsyncpa [#allocation4], 0  ;;  %s382_s12 = smov [#allocation2]   ;;  %s310_s16 = scalar_lea.hbm %s459_s0, 512 }
   0x3   :  { %s16_s13 = sshll.u32 %s382_s12, 4  ;;  %p311_p0 = scmp.ne.s32.totalorder %s459_s0, %s310_s16  ;;  %s17_s13 = int_to_ptr.vmem [resolvable:$true] %s16_s13 }
   0x4   :  { %p314_p1 = scmp.lt.u32.totalorder %s310_s16, %s459_s0 }
   0x6   :  { %p316_p2 = pnand %p314_p1, %p311_p0 }
   0x8   :  { %319 = shalt.err (!%p316_p2)
}
   0x9   :  { %s320_s21 = scalar_lea.vmem %s17_s13, 512  ;;  %p325_p4 = scmp.lt.s32.totalorder %s17_s13, %s17_s13 }
   0xa   :  { %p321_p3 = scmp.ne.s32.totalorder %s17_s13, %s320_s21  ;;  %p326_p5 = scmp.lt.s32.totalorder %s320_s21, %s320_s21 }
   0xc   :  { %p327_p6 = por %p326_p5, %p325_p4 }
   0xe   :  { %p328_p7 = pnand %p327_p6, %p321_p3 }
  0x10   :  { %331 = shalt.err (!%p328_p7)
}
  0x11   :  { %s383_s22 = smov 128   ;;  %s384_s23 = smov 8  }
  0x12   :  { %22 = dma.hbm_to_vmem [thread:$0]  %s459_s0, 512, %s17_s13, [#allocation3], %s383_s22, %s383_s22, %s384_s23  }
  0x13   :  { %s385_s26 = smov [#allocation5]   ;;  %s332_s30 = scalar_lea.hbm %s460_s1, 512 }
  0x14   :  { %s28_s27 = sshll.u32 %s385_s26, 4  ;;  %p333_p8 = scmp.ne.s32.totalorder %s460_s1, %s332_s30  ;;  %s29_s27 = int_to_ptr.vmem [resolvable:$true] %s28_s27 }
  0x15   :  { %p336_p9 = scmp.lt.u32.totalorder %s332_s30, %s460_s1 }
  0x17   :  { %p338_p10 = pnand %p336_p9, %p333_p8 }
  0x19   :  { %341 = shalt.err (!%p338_p10)
}
  0x1a   :  { %s342_s8 = scalar_lea.vmem %s29_s27, 512  ;;  %p347_p12 = scmp.lt.s32.totalorder %s29_s27, %s29_s27 }
  0x1b   :  { %p343_p11 = scmp.ne.s32.totalorder %s29_s27, %s342_s8  ;;  %p348_p13 = scmp.lt.s32.totalorder %s342_s8, %s342_s8 }
  0x1d   :  { %p349_p0 = por %p348_p13, %p347_p12 }
  0x1f   :  { %p350_p1 = pnand %p349_p0, %p343_p11 }
  0x21   :  { %353 = shalt.err (!%p350_p1)
}
  0x22   :  { %34 = dma.hbm_to_vmem [thread:$0]  %s460_s1, 512, %s29_s27, [#allocation6], %s383_s22, %s383_s22, %s384_s23  }
  0x23   :  { %376 = dma.done.wait [#allocation3], 512  }
  0x24   :  { %377 = vsyncadd [#allocation3], 4294966784 }
  0x25   :  { %378 = dma.done.wait [#allocation6], 512  }
  0x26   :  { %379 = vsyncadd [#allocation6], 4294966784  ;;  %vm56_vm0 = vcmask 261120   ;;  %v43_v0 = vld [vmem:[#allocation5] sm:$0xff]  ;;  %v44_v1 = vld [vmem:[#allocation5 + $0x8] sm:$0xff]  ;;  %s386_s11 = smov [#allocation7]  }
  0x27   :  { %v45_v2 = vld [vmem:[#allocation5 + $0x10] sm:$0xff]  ;;  %v289_v3 = vpack.c.bf16 %v44_v1, %v43_v0  ;;  %v141_v4 = vmul.f32 %v43_v0, %v43_v0  ;;  %v142_v5 = vmul.f32 %v44_v1, %v44_v1  ;;  %v46_v6 = vld [vmem:[#allocation5 + $0x18] sm:$0xff]  ;;  %v47_v8 = vld [vmem:[#allocation2] sm:$0xff]  ;;  %s237_s12 = sshll.u32 %s386_s11, 4  ;;  %vm226_vm1 = vcmask 523264   ;;  %s238_s12 = int_to_ptr.vmem [resolvable:$true] %s237_s12 }
  0x28   :  { %v143_v7 = vmul.f32 %v45_v2, %v45_v2  ;;  %v293_v9 = vpack.c.bf16 %v46_v6, %v45_v2  ;;  %v144_v10 = vmul.f32 %v46_v6, %v46_v6  ;;  %275 = vmatprep.mubr.msk.f32.mxu0 %vm56_vm0, %v47_v8  ;;  %v139_v11 = vld [vmem:[#allocation2 + $0x10] sm:$0xff]  ;;  %v48_v14 = vld [vmem:[#allocation2 + $0x8] sm:$0xff]  ;;  %v140_v15 = vld [vmem:[#allocation2 + $0x18] sm:$0xff]  ;;  %s354_s13 = scalar_lea.vmem %s238_s12, 512  ;;  %p359_p3 = scmp.lt.s32.totalorder %s238_s12, %s238_s12 }
  0x29   :  { %290 = vmatprep.subr.bf16.mxu0 %v289_v3  ;;  %v297_v12 = vpack.c.bf16 %v142_v5, %v141_v4  ;;  %286 = vmatprep.mubr.msk.f32.mxu1 %vm56_vm0, %v139_v11  ;;  %v250_v16 = vld [vmem:[%s461_s2] ss:$0 sm:$0xff]  ;;  %p355_p2 = scmp.ne.s32.totalorder %s238_s12, %s354_s13  ;;  %p360_p4 = scmp.lt.s32.totalorder %s354_s13, %s354_s13 }
  0x2a   :  { %292 = vmatpush3.bf16.msra.mxu0 %v289_v3  ;;  %v301_v13 = vpack.c.bf16 %v144_v10, %v143_v7 }
  0x2b   :  { %298 = vmatprep.subr.bf16.mxu1 %v297_v12  ;;  %294 = vmatprep.subr.bf16.mxu0 %v293_v9  ;;  %p361_p5 = por %p360_p4, %p359_p3 }
  0x2c   :  { %300 = vmatpush3.bf16.msra.mxu1 %v297_v12 }
  0x2d   :  { %302 = vmatprep.subr.bf16.mxu1 %v301_v13  ;;  %p362_p6 = pnand %p361_p5, %p355_p2 }
  0x2e   :  { %296 = vmatpush3.bf16.msra.mxu0 %v293_v9 }
  0x30   :  { %304 = vmatpush3.bf16.msra.mxu1 %v301_v13 }
  0x31   :  { %276 = vmatmul.mubr.msk.f32.vlgmr.msra.gmra.mrb[0].mxu0 %vm56_vm0, %v48_v14 }
  0x33   :  { %287 = vmatmul.mubr.msk.f32.vlgmr.msra.gmra.mrb[0].mxu1 %vm56_vm0, %v140_v15 }
 0x104   :  { %v277_v17 = vpop.f32.mrb[0].mxu0 }
 0x105   :  { %v135_v18 = vadd.f32 %v277_v17, %v250_v16  ;;  %v129_v19 = vpop.f32.mrb[1].mxu0 }
 0x106   :  { %v130_v20 = vadd.f32 %v250_v16, %v129_v19  ;;  %v288_v21 = vpop.f32.mrb[0].mxu1 }
 0x107   :  { %228 = vst.msk [vmem:[#allocation7 + $0x8] sm:$0xff] %vm226_vm1, %v135_v18  ;;  %231 = vst.msk [vmem:[#allocation7 + $0x18] sm:$0xff] %vm226_vm1, %v288_v21  ;;  %v217_v22 = vpop.f32.mrb[1].mxu1 }
 0x108   :  { %227 = vst.msk [vmem:[#allocation7] sm:$0xff] %vm226_vm1, %v130_v20  ;;  %230 = vst.msk [vmem:[#allocation7 + $0x10] sm:$0xff] %vm226_vm1, %v217_v22 }
 0x109   :  { %365 = shalt.err (!%p362_p6)
}
 0x10a   :  { %s366_s15 = scalar_lea.hbm %s462_s3, 512 }
 0x10b   :  { %p367_p7 = scmp.ne.s32.totalorder %s462_s3, %s366_s15  ;;  %p370_p8 = scmp.lt.u32.totalorder %s366_s15, %s462_s3 }
 0x10d   :  { %p372_p9 = pnand %p370_p8, %p367_p7 }
 0x10f   :  { %375 = shalt.err (!%p372_p9)
}
 0x110   :  { %243 = dma.vmem_to_hbm [thread:$0]  %s238_s12, 512, %s462_s3, [#allocation4], %s383_s22, %s383_s22, %s384_s23  }
 0x111   :  { %380 = dma.done.wait [#allocation4], 512  }
 0x112   :  { %381 = vsyncadd [#allocation4], 4294966784 }
 0x113   :  { %247 = vsyncpa [#allocation3], 1 }
 0x114   :  { %248 = vsyncpa [#allocation6], 1 }
 0x115   :  { %249 = vsyncpa [#allocation4], 1 }

</bundles_post_ra>
